<compile_context>
chip_gen: v5e
topology: v5e:2x2
jax: 0.10.0
libtpu: 0.0.40
codegen_flags: <defaults>
</compile_context>

<pallas_src>
import functools

import jax
import jax.numpy as jnp
from jax.experimental import pallas as pl
from jax.experimental.pallas import tpu as pltpu

EPS_NORM = 1e-12   # F.normalize default eps
EPS_SIGMA = 1e-10  # sigma.clamp(min=1e-10)


def _vmem_limit_bytes(frac=0.75, fallback=32 * 1024 * 1024):
    """Generation-aware VMEM cap: ~75% of physical VMEM
    (v5e/v6e: 128 MiB -> 96 MiB, v7x: 64 MiB -> 48 MiB).
    Conservative 32 MiB fallback if the query is unavailable."""
    try:
        return int(pltpu.get_tpu_info().vmem_capacity_bytes * frac)
    except Exception:
        return fallback


# ---------------------------------------------------------------------------
# Kernel 1: one-shot power iteration + sigma (tiny, runs once per call, f32)
# ---------------------------------------------------------------------------
def _power_iter_kernel(w_ref, u_ref, v_ref,
                       u_out_ref, v_out_ref, inv_sigma_ref,
                       *, power_iterations: int):
    """w_ref:(Cout,K)  u_ref:(1,Cout)  v_ref:(1,K)  -> u,v,1/sigma (all f32)."""
    w = w_ref[...].astype(jnp.float32)          # (Cout, K)
    u = u_ref[...].astype(jnp.float32)          # (1, Cout)
    v = v_ref[...].astype(jnp.float32)          # (1, K)

    for _ in range(power_iterations):
        # v = normalize(W^T u)
        wtu = jnp.dot(u, w, preferred_element_type=jnp.float32)          # (1, K)
        v = wtu / jnp.maximum(jnp.sqrt(jnp.sum(wtu * wtu)), EPS_NORM)
        # u = normalize(W v)   (contract on K without materializing W^T)
        wv = jax.lax.dot_general(v, w, (((1,), (1,)), ((), ())),
                                 preferred_element_type=jnp.float32)     # (1, Cout)
        u = wv / jnp.maximum(jnp.sqrt(jnp.sum(wv * wv)), EPS_NORM)

    # sigma = dot(u, W v) with the final u, v (also covers power_iterations==0).
    wv = jax.lax.dot_general(v, w, (((1,), (1,)), ((), ())),
                             preferred_element_type=jnp.float32)         # (1, Cout)
    sigma = jnp.maximum(jnp.sum(u * wv), EPS_SIGMA)

    u_out_ref[...] = u.astype(u_out_ref.dtype)
    v_out_ref[...] = v.astype(v_out_ref.dtype)
    inv_sigma_ref[...] = jnp.reshape(1.0 / sigma, (1, 1)).astype(inv_sigma_ref.dtype)


# ---------------------------------------------------------------------------
# Kernel 2: fused im2col + conv-as-GEMM, one sample per grid step.
# ---------------------------------------------------------------------------
def _fused_conv_kernel(x_ref, w_ref, b_ref, o_ref, acc_ref, *, kh, kw, Wp, L):
    """x_ref:(Cin_p, Hp*Wp)  w_ref:(kh*kw, Cout, Cin_p)  b_ref:(Cout,1) f32
       o_ref:(Cout, L)       acc_ref:(Cout, L) f32 VMEM scratch.

    Output flat index p = h*Wp + w (h, w over the output grid); conv tap (i, j)
    reads padded-input flat index p + i*Wp + j, i.e. each tap is just a
    lane-shifted window of the same VMEM slab -> no im2col materialization.
    Columns with w >= Wout are garbage and trimmed by the wrapper.
    """
    for i in range(kh):
        for j in range(kw):
            t = i * kw + j
            off = i * Wp + j
            xs = x_ref[:, off:off + L]                                   # (Cin_p, L)
            contrib = jnp.dot(w_ref[t], xs, preferred_element_type=jnp.float32)
            if t == 0:
                acc_ref[...] = contrib
            else:
                acc_ref[...] += contrib
    o_ref[...] = (acc_ref[...] + b_ref[...]).astype(o_ref.dtype)


# ---------------------------------------------------------------------------
# Wrapper
# ---------------------------------------------------------------------------
def spectral_norm_conv2d(x, w_bar, bias, u, v, *,
                         power_iterations=1, padding=1,
                         compute_dtype=jnp.bfloat16):
    """SpectralNorm(Conv2d).forward.  x: NCHW, stride 1.
    Returns (y_NCHW, u_new, v_new).  Set compute_dtype=jnp.float32 for
    bit-closer parity with the f32 reference (bf16 stream + f32 accumulation
    is the default bandwidth-oriented tradeoff)."""
    N, C, H, W = x.shape
    Cout, Cin, kh, kw = w_bar.shape
    assert Cin == C
    Hp, Wp = H + 2 * padding, W + 2 * padding
    Hout, Wout = Hp - kh + 1, Wp - kw + 1
    K = Cin * kh * kw

    vmem_cap = _vmem_limit_bytes()

    # ---- kernel 1: power iteration + 1/sigma (f32 => exact u / v / sigma) ----
    # TODO(synk): tile the Cout axis (or run the iteration in bf16) if Cout*K*4
    #             ever approaches the per-generation VMEM cap on huge conv layers.
    w_mat = w_bar.reshape(Cout, K).astype(jnp.float32)
    u2 = u.reshape(1, Cout).astype(jnp.float32)
    v2 = v.reshape(1, K).astype(jnp.float32)

    u_new, v_new, inv_sigma = pl.pallas_call(
        functools.partial(_power_iter_kernel, power_iterations=power_iterations),
        out_shape=(jax.ShapeDtypeStruct((1, Cout), jnp.float32),
                   jax.ShapeDtypeStruct((1, K), jnp.float32),
                   jax.ShapeDtypeStruct((1, 1), jnp.float32)),
        grid=(1,),
        in_specs=[pl.BlockSpec((Cout, K), lambda i: (0, 0)),
                  pl.BlockSpec((1, Cout), lambda i: (0, 0)),
                  pl.BlockSpec((1, K), lambda i: (0, 0))],
        out_specs=(pl.BlockSpec((1, Cout), lambda i: (0, 0)),
                   pl.BlockSpec((1, K), lambda i: (0, 0)),
                   pl.BlockSpec((1, 1), lambda i: (0, 0))),
        compiler_params=pltpu.CompilerParams(
            dimension_semantics=("arbitrary",),
            vmem_limit_bytes=vmem_cap),
    )(w_mat, u2, v2)

    # ---- operand prep (tiny XLA glue; no 9x im2col duplication) ----
    Cin_p = ((Cin + 7) // 8) * 8          # sublane-align the contraction axis
    Lx = Hp * Wp                          # flattened padded spatial length
    L = (Hout - 1) * Wp + Wout            # flat output length over padded rows

    xp = jnp.pad(x, ((0, 0), (0, 0), (padding, padding), (padding, padding)))
    x_flat = xp.reshape(N, Cin, Lx)
    if Cin_p > Cin:
        x_flat = jnp.pad(x_flat, ((0, 0), (0, Cin_p - Cin), (0, 0)))
    x_flat = x_flat.astype(compute_dtype)

    # Fold 1/sigma into the (tiny) weight; reorder tap-major: (kh*kw, Cout, Cin_p).
    w_scaled = w_bar.astype(jnp.float32) * inv_sigma[0, 0]
    w_taps = w_scaled.transpose(2, 3, 0, 1).reshape(kh * kw, Cout, Cin)
    if Cin_p > Cin:
        w_taps = jnp.pad(w_taps, ((0, 0), (0, 0), (0, Cin_p - Cin)))
    w_taps = w_taps.astype(compute_dtype)
    b2 = bias.reshape(Cout, 1).astype(jnp.float32)

    # ---- kernel 2: fused conv, one sample per grid step ----
    # TODO(synk): for N == 1 or very large images, additionally tile the H axis
    #             (overlapping row windows need manual make_async_copy).
    out = pl.pallas_call(
        functools.partial(_fused_conv_kernel, kh=kh, kw=kw, Wp=Wp, L=L),
        out_shape=jax.ShapeDtypeStruct((N, Cout, L), x.dtype),
        grid=(N,),
        in_specs=[
            pl.BlockSpec((None, Cin_p, Lx), lambda n: (n, 0, 0)),          # x slab
            pl.BlockSpec((kh * kw, Cout, Cin_p), lambda n: (0, 0, 0)),     # taps (VMEM-resident)
            pl.BlockSpec((Cout, 1), lambda n: (0, 0)),                     # bias
        ],
        out_specs=pl.BlockSpec((None, Cout, L), lambda n: (n, 0, 0)),
        scratch_shapes=[pltpu.VMEM((Cout, L), jnp.float32)],
        compiler_params=pltpu.CompilerParams(
            dimension_semantics=("parallel",),   # shards samples across v7x's 2 TCs
            vmem_limit_bytes=vmem_cap),
    )(x_flat, w_taps, b2)

    # ---- tail: trim the padded-width garbage columns (already NCHW) ----
    y = jnp.pad(out, ((0, 0), (0, 0), (0, Hout * Wp - L)))
    y = y.reshape(N, Cout, Hout, Wp)[:, :, :, :Wout]
    return y.astype(x.dtype), u_new.reshape(-1), v_new.reshape(-1)


# ---------------------------------------------------------------------------
# Pure-JAX replica of the PyTorch semantics (verification only)
# ---------------------------------------------------------------------------
def _reference(x, w_bar, bias, u, v, *, power_iterations=1, padding=1):
    Cout = w_bar.shape[0]
    w_mat = w_bar.reshape(Cout, -1)
    for _ in range(power_iterations):
        vv = w_mat.T @ u
        v = vv / jnp.maximum(jnp.linalg.norm(vv), EPS_NORM)
        wv = w_mat @ v
        u = wv / jnp.maximum(jnp.linalg.norm(wv), EPS_NORM)
    sigma = jnp.maximum(jnp.dot(u, w_mat @ v), EPS_SIGMA)
    w_n = w_bar / sigma
    y = jax.lax.conv_general_dilated(
        x, w_n, window_strides=(1, 1),
        padding=((padding, padding), (padding, padding)),
        dimension_numbers=("NCHW", "OIHW", "NCHW"),
        preferred_element_type=jnp.float32)
    return y + bias.reshape(1, -1, 1, 1), u, v


if __name__ == "__main__":
    # SpectralNorm(nn.Conv2d(4, 8, kernel_size=3, padding=1)), power_iterations=1
    N, C, H, W = 2, 4, 16, 16
    Cout, kh, kw = 8, 3, 3
    Kdim = C * kh * kw

    key = jax.random.PRNGKey(0)
    kx, kw_, kb, ku, kv = jax.random.split(key, 5)

    x = jax.random.normal(kx, (N, C, H, W), dtype=jnp.float32)
    w_bar = jax.random.normal(kw_, (Cout, C, kh, kw), dtype=jnp.float32) * 0.1
    bias = jax.random.normal(kb, (Cout,), dtype=jnp.float32) * 0.01
    # u, v initialized as in _make_params: N(0,1) then L2-normalized
    u0 = jax.random.normal(ku, (Cout,), dtype=jnp.float32)
    u0 = u0 / jnp.maximum(jnp.linalg.norm(u0), EPS_NORM)
    v0 = jax.random.normal(kv, (Kdim,), dtype=jnp.float32)
    v0 = v0 / jnp.maximum(jnp.linalg.norm(v0), EPS_NORM)

    y, u_new, v_new = spectral_norm_conv2d(x, w_bar, bias, u0, v0,
                                           power_iterations=1, padding=1)
    jax.block_until_ready((y, u_new, v_new))

    y_ref, u_ref, v_ref = _reference(x, w_bar, bias, u0, v0,
                                     power_iterations=1, padding=1)
    assert y.shape == (N, Cout, H, W)
    assert jnp.max(jnp.abs(y - y_ref)) < 5e-2, "output mismatch vs reference"
    assert jnp.max(jnp.abs(u_new - u_ref)) < 1e-3, "u mismatch vs reference"
    assert jnp.max(jnp.abs(v_new - v_ref)) < 1e-3, "v mismatch vs reference"

    print("KERNEL_OK")
</pallas_src>

<mosaic_0001>
module attributes {stable_mosaic.version = 11 : i64} {
  func.func @_power_iter_kernel(%arg0: i32, %arg1: memref<8x36xf32, #tpu.memory_space<vmem>>, %arg2: memref<1x8xf32, #tpu.memory_space<vmem>>, %arg3: memref<1x36xf32, #tpu.memory_space<vmem>>, %arg4: memref<1x8xf32, #tpu.memory_space<vmem>>, %arg5: memref<1x36xf32, #tpu.memory_space<vmem>>, %arg6: memref<1x1xf32, #tpu.memory_space<vmem>>) attributes {dimension_semantics = [#tpu.dimension_semantics<arbitrary>], iteration_bounds = array<i64: 1>, scalar_prefetch = 0 : i64, scratch_operands = 0 : i64, tpu.core_type = #tpu.core_type<tc>, window_params = [{pipeline_mode = #tpu.pipeline_mode<synchronous>, transform_indices = @transform_0, window_bounds = array<i64: 8, 36>}, {pipeline_mode = #tpu.pipeline_mode<synchronous>, transform_indices = @transform_1, window_bounds = array<i64: 1, 8>}, {pipeline_mode = #tpu.pipeline_mode<synchronous>, transform_indices = @transform_2, window_bounds = array<i64: 1, 36>}, {pipeline_mode = #tpu.pipeline_mode<synchronous>, transform_indices = @transform_3, window_bounds = array<i64: 1, 8>}, {pipeline_mode = #tpu.pipeline_mode<synchronous>, transform_indices = @transform_4, window_bounds = array<i64: 1, 36>}, {pipeline_mode = #tpu.pipeline_mode<synchronous>, transform_indices = @transform_5, window_bounds = array<i64: 1, 1>}]} {
    %c0 = arith.constant 0 : index
    %c0_0 = arith.constant 0 : index
    %0 = vector.load %arg1[%c0, %c0_0] : memref<8x36xf32, #tpu.memory_space<vmem>>, vector<8x36xf32>
    %c0_1 = arith.constant 0 : index
    %c0_2 = arith.constant 0 : index
    %1 = vector.load %arg2[%c0_1, %c0_2] : memref<1x8xf32, #tpu.memory_space<vmem>>, vector<1x8xf32>
    %cst = arith.constant dense<0.000000e+00> : vector<1x36xf32>
    %2 = tpu.matmul %1, %0, %cst {dimension_numbers = #tpu.dot_dimension_numbers<[1], [0], [0], [1], [0, 0, 1, 1], [], []>} : vector<1x8xf32>, vector<8x36xf32>, vector<1x36xf32> -> vector<1x36xf32>
    %3 = arith.mulf %2, %2 : vector<1x36xf32>
    %4 = vector.shape_cast %3 : vector<1x36xf32> to vector<1x1x36xf32>
    %cst_3 = arith.constant dense<0.000000e+00> : vector<1xf32>
    %5 = vector.multi_reduction <add>, %4, %cst_3 [1, 2] : vector<1x1x36xf32> to vector<1xf32>
    %6 = vector.shape_cast %5 : vector<1xf32> to vector<1x1x1xf32>
    %7 = vector.extract %6[0, 0, 0] : f32 from vector<1x1x1xf32>
    %8 = math.sqrt %7 : f32
    %cst_4 = arith.constant 9.99999996E-13 : f32
    %9 = arith.maximumf %8, %cst_4 : f32
    %10 = vector.broadcast %9 : f32 to vector<1x36xf32>
    %11 = arith.divf %2, %10 : vector<1x36xf32>
    %cst_5 = arith.constant dense<0.000000e+00> : vector<1x8xf32>
    %12 = tpu.matmul %11, %0, %cst_5 {dimension_numbers = #tpu.dot_dimension_numbers<[1], [1], [0], [0], [0, 0, 1, 0], [], []>} : vector<1x36xf32>, vector<8x36xf32>, vector<1x8xf32> -> vector<1x8xf32>
    %13 = arith.mulf %12, %12 : vector<1x8xf32>
    %14 = vector.shape_cast %13 : vector<1x8xf32> to vector<1x1x8xf32>
    %cst_6 = arith.constant dense<0.000000e+00> : vector<1xf32>
    %15 = vector.multi_reduction <add>, %14, %cst_6 [1, 2] : vector<1x1x8xf32> to vector<1xf32>
    %16 = vector.shape_cast %15 : vector<1xf32> to vector<1x1x1xf32>
    %17 = vector.extract %16[0, 0, 0] : f32 from vector<1x1x1xf32>
    %18 = math.sqrt %17 : f32
    %cst_7 = arith.constant 9.99999996E-13 : f32
    %19 = arith.maximumf %18, %cst_7 : f32
    %20 = vector.broadcast %19 : f32 to vector<1x8xf32>
    %21 = arith.divf %12, %20 : vector<1x8xf32>
    %cst_8 = arith.constant dense<0.000000e+00> : vector<1x8xf32>
    %22 = tpu.matmul %11, %0, %cst_8 {dimension_numbers = #tpu.dot_dimension_numbers<[1], [1], [0], [0], [0, 0, 1, 0], [], []>} : vector<1x36xf32>, vector<8x36xf32>, vector<1x8xf32> -> vector<1x8xf32>
    %23 = arith.mulf %21, %22 : vector<1x8xf32>
    %24 = vector.shape_cast %23 : vector<1x8xf32> to vector<1x1x8xf32>
    %cst_9 = arith.constant dense<0.000000e+00> : vector<1xf32>
    %25 = vector.multi_reduction <add>, %24, %cst_9 [1, 2] : vector<1x1x8xf32> to vector<1xf32>
    %26 = vector.shape_cast %25 : vector<1xf32> to vector<1x1x1xf32>
    %27 = vector.extract %26[0, 0, 0] : f32 from vector<1x1x1xf32>
    %cst_10 = arith.constant 1.000000e-10 : f32
    %28 = arith.maximumf %27, %cst_10 : f32
    %c0_11 = arith.constant 0 : index
    %c0_12 = arith.constant 0 : index
    %29 = vector.load %arg4[%c0_11, %c0_12] : memref<1x8xf32, #tpu.memory_space<vmem>>, vector<1x8xf32>
    tpu.vector_store %arg4[%c0_11, %c0_12], %21 {strides = array<i32>} : memref<1x8xf32, #tpu.memory_space<vmem>>, vector<1x8xf32>,
    %c0_13 = arith.constant 0 : index
    %c0_14 = arith.constant 0 : index
    %30 = vector.load %arg5[%c0_13, %c0_14] : memref<1x36xf32, #tpu.memory_space<vmem>>, vector<1x36xf32>
    tpu.vector_store %arg5[%c0_13, %c0_14], %11 {strides = array<i32>} : memref<1x36xf32, #tpu.memory_space<vmem>>, vector<1x36xf32>,
    %cst_15 = arith.constant 1.000000e+00 : f32
    %31 = arith.divf %cst_15, %28 : f32
    %32 = vector.broadcast %31 : f32 to vector<1x1xf32>
    %c0_16 = arith.constant 0 : index
    %c0_17 = arith.constant 0 : index
    %33 = vector.load %arg6[%c0_16, %c0_17] : memref<1x1xf32, #tpu.memory_space<vmem>>, vector<1x1xf32>
    tpu.vector_store %arg6[%c0_16, %c0_17], %32 {strides = array<i32>} : memref<1x1xf32, #tpu.memory_space<vmem>>, vector<1x1xf32>,
    return
  }
  func.func @transform_0(%arg0: i32) -> (i32, i32) {
    %c0_i32 = arith.constant 0 : i32
    %c0_i32_0 = arith.constant 0 : i32
    %c0_i32_1 = arith.constant 0 : i32
    return %c0_i32, %c0_i32_0 : i32, i32
  }
  func.func @transform_1(%arg0: i32) -> (i32, i32) {
    %c0_i32 = arith.constant 0 : i32
    %c0_i32_0 = arith.constant 0 : i32
    %c0_i32_1 = arith.constant 0 : i32
    return %c0_i32, %c0_i32_0 : i32, i32
  }
  func.func @transform_2(%arg0: i32) -> (i32, i32) {
    %c0_i32 = arith.constant 0 : i32
    %c0_i32_0 = arith.constant 0 : i32
    %c0_i32_1 = arith.constant 0 : i32
    return %c0_i32, %c0_i32_0 : i32, i32
  }
  func.func @transform_3(%arg0: i32) -> (i32, i32) {
    %c0_i32 = arith.constant 0 : i32
    %c0_i32_0 = arith.constant 0 : i32
    %c0_i32_1 = arith.constant 0 : i32
    return %c0_i32, %c0_i32_0 : i32, i32
  }
  func.func @transform_4(%arg0: i32) -> (i32, i32) {
    %c0_i32 = arith.constant 0 : i32
    %c0_i32_0 = arith.constant 0 : i32
    %c0_i32_1 = arith.constant 0 : i32
    return %c0_i32, %c0_i32_0 : i32, i32
  }
  func.func @transform_5(%arg0: i32) -> (i32, i32) {
    %c0_i32 = arith.constant 0 : i32
    %c0_i32_0 = arith.constant 0 : i32
    %c0_i32_1 = arith.constant 0 : i32
    return %c0_i32, %c0_i32_0 : i32, i32
  }
}

</mosaic_0001>

<bundles_post_ra>
// kernel: tpu_custom_call.1
= control target key start
LH: loop header
LB: loop body
LE: loop exit
PB: predicated region body
PF: predicated region fallthrough
CT: control target
= control target key end

     0   :  { %11 = vsyncpa [#allocation3], 0  ;;  %s489_s0 = inlined_call_operand.hbm [shape: f32[8,36], index: 0, kind: input, shape index: {}]   ;;  %s490_s1 = inlined_call_operand.hbm [shape: f32[1,8], index: 1, kind: input, shape index: {}]   ;;  %s491_s2 = inlined_call_operand.vmem [shape: f32[1,36], index: 2, kind: input, shape index: {}]   ;;  %s492_s3 = inlined_call_operand.hbm [shape: f32[1,8], index: 3, kind: output, shape index: {0}]   ;;  %s493_s4 = inlined_call_operand.hbm [shape: f32[1,36], index: 4, kind: output, shape index: {1}]   ;;  %s494_s5 = inlined_call_operand.hbm [shape: f32[1,1], index: 5, kind: output, shape index: {2}]  }
   0x1   :  { %12 = vsyncpa [#allocation6], 0 }
   0x2   :  { %13 = vsyncpa [#allocation4], 0 }
   0x3   :  { %14 = vsyncpa [#allocation9], 0  ;;  %s20_s20 = sshll.u32 %s489_s0, 4  ;;  %s428_s21 = smov [#allocation2]   ;;  %s21_s20 = int_to_ptr.hbm [resolvable:$true] %s20_s20 }
   0x4   :  { %s22_s2 = sshll.u32 %s428_s21, 4  ;;  %s31_s24 = sshll.u32 %s490_s1, 4  ;;  %s23_s2 = int_to_ptr.vmem [resolvable:$true] %s22_s2  ;;  %s32_s24 = int_to_ptr.hbm [resolvable:$true] %s31_s24 }
   0x5   :  { %25 = dma.hbm_to_vmem [thread:$0]  %s21_s20, 128, %s23_s2, [#allocation3]  }
   0x6   :  { %s429_s25 = smov [#allocation5]  }
   0x7   :  { %s33_s26 = sshll.u32 %s429_s25, 4  ;;  %s34_s26 = int_to_ptr.vmem [resolvable:$true] %s33_s26 }
   0x8   :  { %36 = dma.hbm_to_vmem [thread:$0]  %s32_s24, 16, %s34_s26, [#allocation6]  }
   0x9   :  { %420 = dma.done.wait [#allocation3], 128  }
   0xa   :  { %421 = vsyncadd [#allocation3], 4294967168 }
   0xb   :  { %422 = dma.done.wait [#allocation6], 16  }
   0xc   :  { %423 = vsyncadd [#allocation6], 4294967280  ;;  %vm49_vm0 = vcmask 64512   ;;  %v47_v0 = vld [vmem:[#allocation2] sm:$0xff]  ;;  %v48_v1 = vld [vmem:[#allocation5] sm:$0x1] }
   0xd   :  { %68 = vmatpush.msra.mxu0 %v47_v0  ;;  %vm74_vm1 = vcmask 286720   ;;  %vm116_vm4 = vcmask 293888   ;;  %s430_s27 = smov 1e-12   ;;  %vm144_vm9 = vcmask 57344   ;;  %s431_s7 = smov [#allocation8]  }
   0xe   :  { %268 = vmatmul.msk.f32.vlgmr.msra.gmra.mxu0 %vm49_vm0, %v48_v1  ;;  %269 = vmatpush.xpose.msk.msra.mxu1 %vm116_vm4, %v47_v0  ;;  %s235_s8 = sshll.u32 %s431_s7, 4  ;;  %s237_s11 = sshll.u32 %s493_s4, 4  ;;  %s236_s8 = int_to_ptr.vmem [resolvable:$true] %s235_s8  ;;  %s238_s11 = int_to_ptr.hbm [resolvable:$true] %s237_s11 }
   0xf   :  { %s226_s14 = sshll.u32 %s492_s3, 4  ;;  %s432_s15 = smov [#allocation7]   ;;  %s227_s14 = int_to_ptr.hbm [resolvable:$true] %s226_s14 }
  0x10   :  { %s224_s16 = sshll.u32 %s432_s15, 4  ;;  %s433_s18 = smov 1e-10   ;;  %s225_s16 = int_to_ptr.vmem [resolvable:$true] %s224_s16 }
  0x11   :  { %s434_s3 = smov [#allocation10]   ;;  %s248_s2 = sshll.u32 %s494_s5, 4  ;;  %s249_s2 = int_to_ptr.hbm [resolvable:$true] %s248_s2 }
  0x12   :  { %s246_s19 = sshll.u32 %s434_s3, 4  ;;  %s247_s19 = int_to_ptr.vmem [resolvable:$true] %s246_s19 }
  0x8b   :  { %v70_v2 = vpop.f32.mrf.mxu0 }
  0x8c   :  { %v73_v3 = vmul.f32 %v70_v2, %v70_v2 }
  0x8e   :  { %v75_v4 = vsel %vm74_vm1, %v73_v3, 0.0 }
  0x8f   :  { %76 = vadd.xlane.f32.xlu0 %v75_v4 }
 0x102   :  { %v77_v5 = vpop.xlane.xlu0 %76 }
 0x103   :  { %v78_v6 = vrot.slane %v77_v5, 4 }
 0x105   :  { %v79_v7 = vadd.f32 %v78_v6, %v77_v5 }
 0x107   :  { %v80_v8 = vrot.slane %v79_v7, 2 }
 0x109   :  { %v81_v9 = vadd.f32 %v80_v8, %v79_v7 }
 0x10b   :  { %v82_v10 = vrot.slane %v81_v9, 1 }
 0x10d   :  { %v83_v11 = vadd.f32 %v82_v10, %v81_v9 }
 0x10f   :  { %271 = vpush %v83_v11 }
 0x140   :  { %s272_s0 = spop %271 }
 0x141   :  { %v85_v12 = vstv %s272_s0 }
 0x142   :  { %290 = vrsqrt.f32 %v85_v12  ;;  %vm93_vm2 = vcmp.eq.f32.partialorder %v85_v12, inf  ;;  %v96_v20 = vand.u32 2147483648, %v85_v12  ;;  %vm95_vm3 = vcmp.eq.f32.partialorder %v85_v12, 0.0 }
 0x148   :  { %v291_v13 = vpop.eup %290 }
 0x149   :  { %v87_v14 = vmul.f32 %v291_v13, %v85_v12 }
 0x14b   :  { %v88_v15 = vmul.f32 %v291_v13, %v87_v14 }
 0x14d   :  { %v89_v16 = vmul.f32 0.5, %v88_v15 }
 0x14f   :  { %v90_v17 = vsub.f32 1.5, %v89_v16 }
 0x151   :  { %v91_v18 = vmul.f32 %v291_v13, %v90_v17 }
 0x153   :  { %v92_v19 = vmul.f32 %v91_v18, %v85_v12 }
 0x155   :  { %v94_v21 = vsel %vm93_vm2, %v85_v12, %v92_v19 }
 0x156   :  { %v97_v22 = vsel %vm95_vm3, %v96_v20, %v94_v21 }
 0x157   :  { %273 = vpush %v97_v22 }
 0x188   :  { %s274_s1 = spop %273 }
 0x189   :  { %s99_s28 = smax.f32 %s430_s27, %s274_s1 }
 0x18a   :  { %v100_v23 = vstv %s99_s28 }
 0x18b   :  { %292 = vrcp.f32 %v100_v23  ;;  %v112_v27 = vand.u32 2147483648, %v100_v23  ;;  %v110_v29 = vand.u32 2147483647, %v100_v23  ;;  %vm106_vm6 = vweird.f32 %v100_v23 }
 0x18d   :  { %v113_v31 = vor.u32 1.1754944e-38, %v112_v27  ;;  %vm111_vm8 = vcmp.eq.f32.partialorder %v110_v29, 8.507059e+37 }
 0x191   :  { %v293_v24 = vpop.eup %292 }
 0x192   :  { %v102_v25 = vmul.f32 %v293_v24, %v100_v23  ;;  %vm107_vm5 = vweird.f32 %v293_v24 }
 0x193   :  { %vm108_vm7 = vmor %vm106_vm6, %vm107_vm5 }
 0x194   :  { %v103_v26 = vsub.f32 1.0, %v102_v25 }
 0x196   :  { %v104_v28 = vmul.f32 %v293_v24, %v103_v26 }
 0x198   :  { %v105_v30 = vadd.f32 %v293_v24, %v104_v28 }
 0x19a   :  { %v109_v32 = vsel %vm108_vm7, %v293_v24, %v105_v30 }
 0x19b   :  { %v114_v33 = vsel %vm111_vm8, %v113_v31, %v109_v32 }
 0x19c   :  { %v115_v34 = vmul.f32 %v114_v33, %v70_v2 }
 0x19e   :  { %270 = vmatmul.msk.f32.vlgmr.msra.gmra.mxu1 %vm116_vm4, %v115_v34  ;;  %199 = vst.msk [vmem:[#allocation8] sm:$0x1] %vm74_vm1, %v115_v34  ;;  %vm217_vm4 = vcmask 0  }
 0x19f   :  { %240 = dma.vmem_to_hbm [thread:$0]  %s236_s8, 16, %s238_s11, [#allocation9]  }
 0x21b   :  { %v140_v35 = vpop.f32.mrf.mxu1 }
 0x21c   :  { %v143_v36 = vmul.f32 %v140_v35, %v140_v35 }
 0x21e   :  { %v145_v37 = vsel %vm144_vm9, %v143_v36, 0.0 }
 0x21f   :  { %146 = vadd.xlane.f32.xlu0 %v145_v37 }
 0x292   :  { %v147_v38 = vpop.xlane.xlu0 %146 }
 0x293   :  { %v148_v39 = vrot.slane %v147_v38, 4 }
 0x295   :  { %v149_v40 = vadd.f32 %v148_v39, %v147_v38 }
 0x297   :  { %v150_v41 = vrot.slane %v149_v40, 2 }
 0x299   :  { %v151_v42 = vadd.f32 %v150_v41, %v149_v40 }
 0x29b   :  { %v152_v43 = vrot.slane %v151_v42, 1 }
 0x29d   :  { %v153_v44 = vadd.f32 %v152_v43, %v151_v42 }
 0x29f   :  { %275 = vpush %v153_v44 }
 0x2d0   :  { %s276_s29 = spop %275 }
 0x2d1   :  { %v155_v45 = vstv %s276_s29 }
 0x2d2   :  { %294 = vrsqrt.f32 %v155_v45  ;;  %vm163_vm10 = vcmp.eq.f32.partialorder %v155_v45, inf  ;;  %v166_v53 = vand.u32 2147483648, %v155_v45  ;;  %vm165_vm11 = vcmp.eq.f32.partialorder %v155_v45, 0.0 }
 0x2d8   :  { %v295_v46 = vpop.eup %294 }
 0x2d9   :  { %v157_v47 = vmul.f32 %v295_v46, %v155_v45 }
 0x2db   :  { %v158_v48 = vmul.f32 %v295_v46, %v157_v47 }
 0x2dd   :  { %v159_v49 = vmul.f32 0.5, %v158_v48 }
 0x2df   :  { %v160_v50 = vsub.f32 1.5, %v159_v49 }
 0x2e1   :  { %v161_v51 = vmul.f32 %v295_v46, %v160_v50 }
 0x2e3   :  { %v162_v52 = vmul.f32 %v161_v51, %v155_v45 }
 0x2e5   :  { %v164_v54 = vsel %vm163_vm10, %v155_v45, %v162_v52 }
 0x2e6   :  { %v167_v55 = vsel %vm165_vm11, %v166_v53, %v164_v54 }
 0x2e7   :  { %277 = vpush %v167_v55 }
 0x318   :  { %s278_s30 = spop %277 }
 0x319   :  { %s169_s6 = smax.f32 %s430_s27, %s278_s30 }
 0x31a   :  { %v170_v56 = vstv %s169_s6 }
 0x31b   :  { %296 = vrcp.f32 %v170_v56  ;;  %v182_v60 = vand.u32 2147483648, %v170_v56  ;;  %v180_v62 = vand.u32 2147483647, %v170_v56  ;;  %vm176_vm13 = vweird.f32 %v170_v56 }
 0x31d   :  { %v183_v0 = vor.u32 1.1754944e-38, %v182_v60  ;;  %vm181_vm15 = vcmp.eq.f32.partialorder %v180_v62, 8.507059e+37 }
 0x321   :  { %v297_v57 = vpop.eup %296 }
 0x322   :  { %v172_v58 = vmul.f32 %v297_v57, %v170_v56  ;;  %vm177_vm12 = vweird.f32 %v297_v57 }
 0x323   :  { %vm178_vm14 = vmor %vm176_vm13, %vm177_vm12 }
 0x324   :  { %v173_v59 = vsub.f32 1.0, %v172_v58 }
 0x326   :  { %v174_v61 = vmul.f32 %v297_v57, %v173_v59 }
 0x328   :  { %v175_v63 = vadd.f32 %v297_v57, %v174_v61 }
 0x32a   :  { %v179_v1 = vsel %vm178_vm14, %v297_v57, %v175_v63 }
 0x32b   :  { %v184_v2 = vsel %vm181_vm15, %v183_v0, %v179_v1 }
 0x32c   :  { %v185_v3 = vmul.f32 %v184_v2, %v140_v35 }
 0x32e   :  { %v186_v4 = vmul.f32 %v185_v3, %v140_v35  ;;  %198 = vst.msk [vmem:[#allocation7] sm:$0x1] %vm144_vm9, %v185_v3 }
 0x32f   :  { %229 = dma.vmem_to_hbm [thread:$0]  %s225_s16, 16, %s227_s14, [#allocation4]  }
 0x330   :  { %v187_v5 = vsel %vm144_vm9, %v186_v4, 0.0 }
 0x331   :  { %188 = vadd.xlane.f32.xlu1 %v187_v5 }
 0x3a4   :  { %v189_v6 = vpop.xlane.xlu1 %188 }
 0x3a5   :  { %v190_v7 = vrot.slane %v189_v6, 4 }
 0x3a7   :  { %v191_v8 = vadd.f32 %v190_v7, %v189_v6 }
 0x3a9   :  { %v192_v9 = vrot.slane %v191_v8, 2 }
 0x3ab   :  { %v193_v10 = vadd.f32 %v192_v9, %v191_v8 }
 0x3ad   :  { %v194_v11 = vrot.slane %v193_v10, 1 }
 0x3af   :  { %v195_v12 = vadd.f32 %v194_v11, %v193_v10 }
 0x3b1   :  { %279 = vpush %v195_v12 }
 0x3e2   :  { %s280_s17 = spop %279 }
 0x3e3   :  { %s197_s4 = smax.f32 %s433_s18, %s280_s17 }
 0x3e4   :  { %v200_v13 = vstv %s197_s4 }
 0x3e5   :  { %298 = vrcp.f32 %v200_v13  ;;  %v212_v17 = vand.u32 2147483648, %v200_v13  ;;  %v210_v19 = vand.u32 2147483647, %v200_v13  ;;  %vm206_vm1 = vweird.f32 %v200_v13 }
 0x3e7   :  { %v213_v21 = vor.u32 1.1754944e-38, %v212_v17  ;;  %vm211_vm3 = vcmp.eq.f32.partialorder %v210_v19, 8.507059e+37 }
 0x3eb   :  { %v299_v14 = vpop.eup %298 }
 0x3ec   :  { %v202_v15 = vmul.f32 %v299_v14, %v200_v13  ;;  %vm207_vm0 = vweird.f32 %v299_v14 }
 0x3ed   :  { %vm208_vm2 = vmor %vm206_vm1, %vm207_vm0 }
 0x3ee   :  { %v203_v16 = vsub.f32 1.0, %v202_v15 }
 0x3f0   :  { %v204_v18 = vmul.f32 %v299_v14, %v203_v16 }
 0x3f2   :  { %v205_v20 = vadd.f32 %v299_v14, %v204_v18 }
 0x3f4   :  { %v209_v22 = vsel %vm208_vm2, %v299_v14, %v205_v20 }
 0x3f5   :  { %v214_v23 = vsel %vm211_vm3, %v213_v21, %v209_v22 }
 0x3f6   :  { %281 = vpush %v214_v23 }
 0x427   :  { %s282_s22 = spop %281 }
 0x428   :  { %v216_v24 = vstv %s282_s22 }
 0x429   :  { %218 = vst.msk [vmem:[#allocation10] sm:$0x1] %vm217_vm4, %v216_v24 }
 0x42a   :  { %251 = dma.vmem_to_hbm [thread:$0]  %s247_s19, 16, %s249_s2, [#allocation9]  }
 0x42b   :  { %424 = dma.done.wait [#allocation4], 16  }
 0x42c   :  { %425 = vsyncadd [#allocation4], 4294967280 }
 0x42d   :  { %426 = dma.done.wait [#allocation9], 32  }
 0x42e   :  { %427 = vsyncadd [#allocation9], 4294967264 }
 0x42f   :  { %264 = vsyncpa [#allocation3], 1 }
 0x430   :  { %265 = vsyncpa [#allocation6], 1 }
 0x431   :  { %266 = vsyncpa [#allocation4], 1 }
 0x432   :  { %267 = vsyncpa [#allocation9], 1 }

</bundles_post_ra>
